<compile_context>
chip_gen: v6e
topology: v6e:2x2x1
jax: 0.10.0
libtpu: 0.0.40
codegen_flags: <defaults>
</compile_context>

<pallas_src>
import jax
import jax.numpy as jnp
from jax.experimental import pallas as pl
from jax.experimental.pallas import tpu as pltpu


def _linear_kernel(x_ref, w_ref, b_ref, o_ref):
    # x_ref: (tile_rows, cols_in)   w_ref: (cols_in, cols_out)
    # b_ref: (1, cols_out)          o_ref: (tile_rows, cols_out)
    x = x_ref[...].astype(jnp.float32)  # torch .float() semantics, done in-kernel
    y = jnp.dot(x, w_ref[...], preferred_element_type=jnp.float32)
    o_ref[...] = y + b_ref[...]


def _round_up(a, b):
    return ((a + b - 1) // b) * b


def _tpu_generation():
    """Best-effort TPU generation tag ('v5e', 'v6e', 'v7x' or '')."""
    try:
        kind = jax.devices()[0].device_kind.lower()
    except Exception:
        return ""
    if "v5 lite" in kind or "v5e" in kind or "v5litepod" in kind:
        return "v5e"
    if "v6" in kind:
        return "v6e"
    if "v7" in kind or "tpu7" in kind:
        return "v7x"
    return ""


def linear_node_encoder(x, weight, bias, *, vmem_budget_bytes=None):
    """y = x.float() @ weight.T + bias

    x:      [num_nodes, dim_in]  (any float/int dtype; cast to f32 in-kernel)
    weight: [emb_dim, dim_in]    (torch nn.Linear layout)
    bias:   [emb_dim]
    returns [num_nodes, emb_dim] float32
    """
    num_nodes, dim_in = x.shape
    emb_dim = weight.shape[0]

    w_t = weight.astype(jnp.float32).T          # [dim_in, emb_dim]
    b = bias.astype(jnp.float32)

    gen = _tpu_generation()

    # ---- Lane packing: pack p nodes into one 128-lane output row so every
    # output store is a full unmasked 128-lane vst (biggest measured lever).
    p = 1
    if emb_dim < 128 and 128 % emb_dim == 0:
        cand = 128 // emb_dim
        # Cap the kron flop inflation (p x) when dim_in is large and p is big;
        # otherwise always pack (pad up to p-1 zero rows, never fall back to
        # masked narrow stores).
        if not (cand > 4 and dim_in > 256):
            p = cand

    if p > 1:
        padded_nodes = _round_up(num_nodes, p)
        if padded_nodes != num_nodes:
            x = jnp.pad(x, ((0, padded_nodes - num_nodes), (0, 0)))
        rows = padded_nodes // p
        cols_in = p * dim_in
        cols_out = p * emb_dim                   # == 128 (lane dense)
        x_in = x.reshape(rows, cols_in)          # free row-major view
        w_in = jnp.kron(jnp.eye(p, dtype=jnp.float32), w_t)  # block-diagonal
        b_in = jnp.tile(b, p).reshape(1, cols_out)
    else:
        padded_nodes = num_nodes
        rows, cols_in, cols_out = num_nodes, dim_in, emb_dim
        x_in = x
        w_in = w_t
        b_in = b.reshape(1, cols_out)

    # ---- Tile sizing from a VMEM byte budget (lane-padded, double-buffered
    # streamed blocks; grid-invariant weight/bias conservatively counted 2x
    # since constant-index blocks are still double-buffered by default).
    if vmem_budget_bytes is None:
        vmem_budget_bytes = (20 << 20) if gen == "v5e" else (24 << 20)
    in_row_bytes = _round_up(cols_in, 128) * x_in.dtype.itemsize
    out_row_bytes = _round_up(cols_out, 128) * 4
    w_bytes = _round_up(cols_in, 8) * _round_up(cols_out, 128) * 4
    b_bytes = 8 * 128 * 4
    fixed_bytes = 2 * (w_bytes + b_bytes)
    per_row_bytes = 2 * (in_row_bytes + out_row_bytes)
    avail = max(0, vmem_budget_bytes - fixed_bytes)
    tile_rows = (avail // per_row_bytes // 128) * 128
    tile_rows = max(128, min(tile_rows, 8192))
    # Never allocate far more than the problem needs.
    tile_rows = min(tile_rows, _round_up(rows, 128))
    # v7x has 2 TensorCores: ensure >= 2 grid steps so the "parallel" node
    # axis can be sharded across both cores (v5e/v6e: keep the biggest tile).
    if gen == "v7x" and rows > 128:
        tile_rows = min(tile_rows, max(128, _round_up(pl.cdiv(rows, 2), 128)))

    grid = (pl.cdiv(rows, tile_rows),)

    # Advisory cost: the packed matmul really does p-fold more flops.
    bytes_accessed = (
        x_in.size * x_in.dtype.itemsize
        + w_in.size * 4
        + b_in.size * 4
        + rows * cols_out * 4
    )
    cost = pl.CostEstimate(
        flops=2 * rows * cols_in * cols_out,
        bytes_accessed=bytes_accessed,
        transcendentals=0,
    )

    out = pl.pallas_call(
        _linear_kernel,
        out_shape=jax.ShapeDtypeStruct((rows, cols_out), jnp.float32),
        grid_spec=pltpu.PrefetchScalarGridSpec(
            num_scalar_prefetch=0,
            grid=grid,
            in_specs=[
                pl.BlockSpec((tile_rows, cols_in), lambda i: (i, 0)),
                pl.BlockSpec((cols_in, cols_out), lambda i: (0, 0)),  # resident
                pl.BlockSpec((1, cols_out), lambda i: (0, 0)),        # resident
            ],
            out_specs=pl.BlockSpec((tile_rows, cols_out), lambda i: (i, 0)),
        ),
        compiler_params=pltpu.CompilerParams(
            dimension_semantics=("parallel",),
            vmem_limit_bytes=32 * 1024 * 1024,
        ),
        cost_estimate=cost,
    )(x_in, w_in, b_in)

    # Free row-major view back to [padded_nodes, emb_dim]; drop pad rows.
    out = out.reshape(padded_nodes, emb_dim)
    if padded_nodes != num_nodes:
        out = out[:num_nodes]
    return out


if __name__ == "__main__":
    key = jax.random.PRNGKey(0)
    k_x, k_w, k_b = jax.random.split(key, 3)

    # cfg.share.dim_in -> dim_in, emb_dim from module args
    num_nodes, dim_in, emb_dim = 200, 32, 64

    x = jax.random.normal(k_x, (num_nodes, dim_in), dtype=jnp.float32)
    # torch.nn.Linear-shaped params: W [emb_dim, dim_in], b [emb_dim]
    weight = jax.random.normal(k_w, (emb_dim, dim_in), dtype=jnp.float32) * 0.1
    bias = jax.random.normal(k_b, (emb_dim,), dtype=jnp.float32) * 0.1

    # Packed (lane-dense) path: 200 nodes, emb_dim=64 -> 2 nodes per 128-lane row.
    y = linear_node_encoder(x, weight, bias)
    jax.block_until_ready(y)
    y_ref = x @ weight.T + bias
    assert y.shape == (num_nodes, emb_dim)
    assert jnp.allclose(y, y_ref, atol=2e-4, rtol=2e-4)

    # Odd node count: now padded to a multiple of p and still lane-packed.
    x_odd = x[:199]
    y_odd = linear_node_encoder(x_odd, weight, bias)
    jax.block_until_ready(y_odd)
    y_odd_ref = x_odd @ weight.T + bias
    assert y_odd.shape == (199, emb_dim)
    assert jnp.allclose(y_odd, y_odd_ref, atol=2e-4, rtol=2e-4)

    # Non-packable emb_dim (48 doesn't divide 128) + bf16 input (.float() cast).
    emb_dim2 = 48
    w2 = jax.random.normal(k_w, (emb_dim2, dim_in), dtype=jnp.float32) * 0.1
    b2 = jax.random.normal(k_b, (emb_dim2,), dtype=jnp.float32) * 0.1
    x_bf16 = x.astype(jnp.bfloat16)
    y2 = linear_node_encoder(x_bf16, w2, b2)
    jax.block_until_ready(y2)
    y2_ref = x_bf16.astype(jnp.float32) @ w2.T + b2
    assert y2.shape == (num_nodes, emb_dim2)
    assert jnp.allclose(y2, y2_ref, atol=2e-4, rtol=2e-4)

    print("KERNEL_OK")
</pallas_src>

<mosaic_0001>
module attributes {stable_mosaic.version = 11 : i64} {
  func.func @_linear_kernel(%arg0: i32, %arg1: memref<128x64xf32, #tpu.memory_space<vmem>>, %arg2: memref<64x128xf32, #tpu.memory_space<vmem>>, %arg3: memref<1x128xf32, #tpu.memory_space<vmem>>, %arg4: memref<128x128xf32, #tpu.memory_space<vmem>>) attributes {dimension_semantics = [#tpu.dimension_semantics<parallel>], iteration_bounds = array<i64: 1>, scalar_prefetch = 0 : i64, scratch_operands = 0 : i64, tpu.core_type = #tpu.core_type<tc>, window_params = [{transform_indices = @transform_0, window_bounds = array<i64: 128, 64>}, {pipeline_mode = #tpu.pipeline_mode<synchronous>, transform_indices = @transform_1, window_bounds = array<i64: 64, 128>}, {pipeline_mode = #tpu.pipeline_mode<synchronous>, transform_indices = @transform_2, window_bounds = array<i64: 1, 128>}, {transform_indices = @transform_3, window_bounds = array<i64: 128, 128>}]} {
    %c0 = arith.constant 0 : index
    %c0_0 = arith.constant 0 : index
    %0 = vector.load %arg1[%c0, %c0_0] : memref<128x64xf32, #tpu.memory_space<vmem>>, vector<128x64xf32>
    %c0_1 = arith.constant 0 : index
    %c0_2 = arith.constant 0 : index
    %1 = vector.load %arg2[%c0_1, %c0_2] : memref<64x128xf32, #tpu.memory_space<vmem>>, vector<64x128xf32>
    %cst = arith.constant dense<0.000000e+00> : vector<128x128xf32>
    %2 = tpu.matmul %0, %1, %cst {dimension_numbers = #tpu.dot_dimension_numbers<[1], [0], [0], [1], [0, 0, 1, 1], [], []>} : vector<128x64xf32>, vector<64x128xf32>, vector<128x128xf32> -> vector<128x128xf32>
    %c0_3 = arith.constant 0 : index
    %c0_4 = arith.constant 0 : index
    %3 = vector.load %arg3[%c0_3, %c0_4] : memref<1x128xf32, #tpu.memory_space<vmem>>, vector<1x128xf32>
    %4 = vector.broadcast %3 : vector<1x128xf32> to vector<128x128xf32>
    %5 = arith.addf %2, %4 : vector<128x128xf32>
    %c0_5 = arith.constant 0 : index
    %c0_6 = arith.constant 0 : index
    %6 = vector.load %arg4[%c0_5, %c0_6] : memref<128x128xf32, #tpu.memory_space<vmem>>, vector<128x128xf32>
    tpu.vector_store %arg4[%c0_5, %c0_6], %5 {strides = array<i32>} : memref<128x128xf32, #tpu.memory_space<vmem>>, vector<128x128xf32>,
    return
  }
  func.func @transform_0(%arg0: i32) -> (i32, i32) {
    %c0_i32 = arith.constant 0 : i32
    %c0_i32_0 = arith.constant 0 : i32
    return %arg0, %c0_i32 : i32, i32
  }
  func.func @transform_1(%arg0: i32) -> (i32, i32) {
    %c0_i32 = arith.constant 0 : i32
    %c0_i32_0 = arith.constant 0 : i32
    %c0_i32_1 = arith.constant 0 : i32
    return %c0_i32, %c0_i32_0 : i32, i32
  }
  func.func @transform_2(%arg0: i32) -> (i32, i32) {
    %c0_i32 = arith.constant 0 : i32
    %c0_i32_0 = arith.constant 0 : i32
    %c0_i32_1 = arith.constant 0 : i32
    return %c0_i32, %c0_i32_0 : i32, i32
  }
  func.func @transform_3(%arg0: i32) -> (i32, i32) {
    %c0_i32 = arith.constant 0 : i32
    %c0_i32_0 = arith.constant 0 : i32
    return %arg0, %c0_i32 : i32, i32
  }
}

</mosaic_0001>

<bundles_post_ra>
// kernel: tpu_custom_call.1
= control target key start
LH: loop header
LB: loop body
LE: loop exit
PB: predicated region body
PF: predicated region fallthrough
CT: control target
= control target key end

     0   :  { %8 = vsyncpa [#allocation3], 0  ;;  %vm46_vm0 = vcmask 523264   ;;  %s511_s0 = inlined_call_operand.vmem [shape: f32[100,64], index: 0, kind: input, shape index: {}]   ;;  %s512_s1 = inlined_call_operand.vmem [shape: f32[64,128], index: 1, kind: input, shape index: {}]   ;;  %s513_s2 = inlined_call_operand.vmem [shape: f32[1,128], index: 2, kind: input, shape index: {}]   ;;  %s514_s3 = inlined_call_operand.hbm [shape: f32[100,128], index: 3, kind: output, shape index: {}]  }
   0x1   :  { %v38_v0 = vld [vmem:[%s512_s1 + $0x38] sm:$0xff]  ;;  %v37_v1 = vld [vmem:[%s512_s1 + $0x30] sm:$0xff]  ;;  %v36_v2 = vld [vmem:[%s512_s1 + $0x28] sm:$0xff] }
   0x2   :  { %313 = vmatprep.subr.mxu0 %v38_v0  ;;  %353 = vmatprep.subr.mxu1 %v38_v0  ;;  %v35_v3 = vld [vmem:[%s512_s1 + $0x20] sm:$0xff]  ;;  %v34_v4 = vld [vmem:[%s512_s1 + $0x18] sm:$0xff]  ;;  %v33_v5 = vld [vmem:[%s512_s1 + $0x10] sm:$0xff] }
   0x3   :  { %314 = vmatpush3.msra.mxu0 %v38_v0  ;;  %361 = vmatpush3.msra.mxu1 %v38_v0  ;;  %v32_v6 = vld [vmem:[%s512_s1 + $0x8] sm:$0xff]  ;;  %v31_v7 = vld [vmem:[%s512_s1] sm:$0xff]  ;;  %v17_v12 = vld [vmem:[%s511_s0 + $0x10] sm:$0xff] }
   0x4   :  { %315 = vmatprep.subr.mxu0 %v37_v1  ;;  %354 = vmatprep.subr.mxu1 %v37_v1  ;;  %v15_v8 = vld [vmem:[%s511_s0] sm:$0xff]  ;;  %v16_v10 = vld [vmem:[%s511_s0 + $0x8] sm:$0xff]  ;;  %v25_v13 = vld [vmem:[%s511_s0 + $0x50] sm:$0xff] }
   0x5   :  { %316 = vmatpush3.msra.mxu0 %v37_v1  ;;  %362 = vmatpush3.msra.mxu1 %v37_v1  ;;  %v23_v9 = vld [vmem:[%s511_s0 + $0x40] sm:$0xff]  ;;  %v24_v11 = vld [vmem:[%s511_s0 + $0x48] sm:$0xff]  ;;  %v18_v14 = vld [vmem:[%s511_s0 + $0x18] sm:$0xff] }
   0x6   :  { %317 = vmatprep.subr.mxu0 %v36_v2  ;;  %355 = vmatprep.subr.mxu1 %v36_v2  ;;  %v26_v15 = vld [vmem:[%s511_s0 + $0x58] sm:$0xff]  ;;  %v19_v16 = vld [vmem:[%s511_s0 + $0x20] sm:$0xff]  ;;  %v20_v18 = vld [vmem:[%s511_s0 + $0x28] sm:$0xff] }
   0x7   :  { %318 = vmatpush3.msra.mxu0 %v36_v2  ;;  %363 = vmatpush3.msra.mxu1 %v36_v2  ;;  %v27_v17 = vld [vmem:[%s511_s0 + $0x60] sm:$0xff]  ;;  %v28_v19 = vld [vmem:[%s511_s0 + $0x68] sm:$0xff]  ;;  %v21_v20 = vld [vmem:[%s511_s0 + $0x30] sm:$0xff] }
   0x8   :  { %319 = vmatprep.subr.mxu0 %v35_v3  ;;  %356 = vmatprep.subr.mxu1 %v35_v3  ;;  %v29_v21 = vld [vmem:[%s511_s0 + $0x70] sm:$0xff]  ;;  %v22_v22 = vld [vmem:[%s511_s0 + $0x38] sm:$0xff]  ;;  %v272_v24 = vld [vmem:[%s513_s2] ss:$0 sm:$0xff] }
   0x9   :  { %320 = vmatpush3.msra.mxu0 %v35_v3  ;;  %364 = vmatpush3.msra.mxu1 %v35_v3  ;;  %v30_v23 = vld [vmem:[%s511_s0 + $0x78] sm:$0xff] }
   0xa   :  { %321 = vmatprep.subr.mxu0 %v34_v4  ;;  %357 = vmatprep.subr.mxu1 %v34_v4 }
   0xb   :  { %322 = vmatpush3.msra.mxu0 %v34_v4  ;;  %365 = vmatpush3.msra.mxu1 %v34_v4 }
   0xc   :  { %323 = vmatprep.subr.mxu0 %v33_v5  ;;  %358 = vmatprep.subr.mxu1 %v33_v5 }
   0xd   :  { %324 = vmatpush3.msra.mxu0 %v33_v5  ;;  %366 = vmatpush3.msra.mxu1 %v33_v5 }
   0xe   :  { %325 = vmatprep.subr.mxu0 %v32_v6  ;;  %359 = vmatprep.subr.mxu1 %v32_v6 }
   0xf   :  { %326 = vmatpush3.msra.mxu0 %v32_v6  ;;  %367 = vmatpush3.msra.mxu1 %v32_v6 }
  0x10   :  { %327 = vmatprep.subr.mxu0 %v31_v7  ;;  %360 = vmatprep.subr.mxu1 %v31_v7 }
  0x11   :  { %328 = vmatpush3.msra.mxu0 %v31_v7  ;;  %368 = vmatpush3.msra.mxu1 %v31_v7 }
  0x12   :  { %329 = vmatprep.mubr.msk.f32.mxu0 %vm46_vm0, %v15_v8  ;;  %341 = vmatprep.mubr.msk.f32.mxu1 %vm46_vm0, %v23_v9 }
  0x13   :  { %330 = vmatmul.mubr.msk.f32.vlgmr.msra.gmra.mxu0 %vm46_vm0, %v16_v10  ;;  %342 = vmatmul.mubr.msk.f32.vlgmr.msra.gmra.mxu1 %vm46_vm0, %v24_v11 }
  0x14   :  { %332 = vmatprep.mubr.msk.f32.mxu0 %vm46_vm0, %v17_v12  ;;  %344 = vmatprep.mubr.msk.f32.mxu1 %vm46_vm0, %v25_v13 }
  0x17   :  { %333 = vmatmul.mubr.msk.f32.gmra.mxu0 %vm46_vm0, %v18_v14  ;;  %345 = vmatmul.mubr.msk.f32.gmra.mxu1 %vm46_vm0, %v26_v15 }
  0x18   :  { %335 = vmatprep.mubr.msk.f32.mxu0 %vm46_vm0, %v19_v16  ;;  %347 = vmatprep.mubr.msk.f32.mxu1 %vm46_vm0, %v27_v17 }
  0x1b   :  { %336 = vmatmul.mubr.msk.f32.gmra.mxu0 %vm46_vm0, %v20_v18  ;;  %348 = vmatmul.mubr.msk.f32.gmra.mxu1 %vm46_vm0, %v28_v19 }
  0x1c   :  { %338 = vmatprep.mubr.msk.f32.mxu0 %vm46_vm0, %v21_v20  ;;  %350 = vmatprep.mubr.msk.f32.mxu1 %vm46_vm0, %v29_v21 }
  0x1f   :  { %339 = vmatmul.mubr.msk.f32.gmra.mxu0 %vm46_vm0, %v22_v22  ;;  %351 = vmatmul.mubr.msk.f32.gmra.mxu1 %vm46_vm0, %v30_v23 }
  0xd3   :  { %v331_v25 = vpop.f32.mrf.mxu0  ;;  %v343_v26 = vpop.f32.mrf.mxu1 }
  0xd4   :  { %v167_v27 = vadd.f32 %v331_v25, %v272_v24  ;;  %v207_v28 = vadd.f32 %v343_v26, %v272_v24 }
  0xd5   :  { %v161_v29 = vpop.f32.mrf.mxu0  ;;  %v201_v30 = vpop.f32.mrf.mxu1 }
  0xd6   :  { %241 = vst [vmem:[#allocation2 + $0x8] sm:$0xff] %v167_v27  ;;  %249 = vst [vmem:[#allocation2 + $0x48] sm:$0xff] %v207_v28  ;;  %v162_v31 = vadd.f32 %v272_v24, %v161_v29  ;;  %v202_v32 = vadd.f32 %v272_v24, %v201_v30 }
  0xd7   :  { %v334_v33 = vpop.f32.mrf.mxu0  ;;  %v346_v34 = vpop.f32.mrf.mxu1 }
  0xd8   :  { %240 = vst [vmem:[#allocation2] sm:$0xff] %v162_v31  ;;  %248 = vst [vmem:[#allocation2 + $0x40] sm:$0xff] %v202_v32  ;;  %v177_v35 = vadd.f32 %v334_v33, %v272_v24  ;;  %v217_v36 = vadd.f32 %v346_v34, %v272_v24 }
  0xd9   :  { %v171_v37 = vpop.f32.mrf.mxu0  ;;  %v211_v38 = vpop.f32.mrf.mxu1 }
  0xda   :  { %243 = vst [vmem:[#allocation2 + $0x18] sm:$0xff] %v177_v35  ;;  %251 = vst [vmem:[#allocation2 + $0x58] sm:$0xff] %v217_v36  ;;  %v172_v39 = vadd.f32 %v272_v24, %v171_v37  ;;  %v212_v40 = vadd.f32 %v272_v24, %v211_v38 }
  0xdb   :  { %v337_v41 = vpop.f32.mrf.mxu0  ;;  %v349_v42 = vpop.f32.mrf.mxu1 }
  0xdc   :  { %242 = vst [vmem:[#allocation2 + $0x10] sm:$0xff] %v172_v39  ;;  %250 = vst [vmem:[#allocation2 + $0x50] sm:$0xff] %v212_v40  ;;  %v187_v43 = vadd.f32 %v337_v41, %v272_v24  ;;  %v227_v44 = vadd.f32 %v349_v42, %v272_v24 }
  0xdd   :  { %v181_v45 = vpop.f32.mrf.mxu0  ;;  %v221_v46 = vpop.f32.mrf.mxu1 }
  0xde   :  { %245 = vst [vmem:[#allocation2 + $0x28] sm:$0xff] %v187_v43  ;;  %253 = vst [vmem:[#allocation2 + $0x68] sm:$0xff] %v227_v44  ;;  %v182_v47 = vadd.f32 %v272_v24, %v181_v45  ;;  %v222_v48 = vadd.f32 %v272_v24, %v221_v46 }
  0xdf   :  { %v340_v49 = vpop.f32.mrf.mxu0  ;;  %v352_v50 = vpop.f32.mrf.mxu1 }
  0xe0   :  { %244 = vst [vmem:[#allocation2 + $0x20] sm:$0xff] %v182_v47  ;;  %252 = vst [vmem:[#allocation2 + $0x60] sm:$0xff] %v222_v48  ;;  %v197_v51 = vadd.f32 %v340_v49, %v272_v24  ;;  %v237_v52 = vadd.f32 %v352_v50, %v272_v24 }
  0xe1   :  { %v191_v53 = vpop.f32.mrf.mxu0  ;;  %v231_v54 = vpop.f32.mrf.mxu1 }
  0xe2   :  { %247 = vst [vmem:[#allocation2 + $0x38] sm:$0xff] %v197_v51  ;;  %255 = vst [vmem:[#allocation2 + $0x78] sm:$0xff] %v237_v52  ;;  %v192_v55 = vadd.f32 %v272_v24, %v191_v53  ;;  %v232_v56 = vadd.f32 %v272_v24, %v231_v54 }
  0xe4   :  { %246 = vst [vmem:[#allocation2 + $0x30] sm:$0xff] %v192_v55  ;;  %254 = vst [vmem:[#allocation2 + $0x70] sm:$0xff] %v232_v56 }
  0xe5   :  { %260 = vsyncadd [#allocation3], 384  ;;  %s394_s0 = smov [#allocation2]  }
  0xe6   :  { %s261_s2 = sshll.u32 %s394_s0, 4  ;;  %s262_s2 = int_to_ptr.vmem [resolvable:$true] %s261_s2 }
  0xe7   :  { %s372_s1 = scalar_lea.vmem %s262_s2, 1664  ;;  %s376_s7 = scalar_lea.vmem %s262_s2, 2048 }
  0xe8   :  { %p373_p0 = scmp.ne.s32.totalorder %s262_s2, %s372_s1  ;;  %p377_p1 = scmp.lt.s32.totalorder %s262_s2, %s262_s2 }
  0xe9   :  { %p378_p2 = scmp.lt.s32.totalorder %s376_s7, %s372_s1 }
  0xeb   :  { %p379_p3 = por %p378_p2, %p377_p1 }
  0xed   :  { %p380_p4 = pnand %p379_p3, %p373_p0 }
  0xef   :  { %383 = shalt.err (!%p380_p4)
}
  0xf0   :  { %s395_s8 = smov 128   ;;  %s396_s9 = smov 8  }
  0xf1   :  { %267 = dma.vmem_to_hbm [thread:$0]  %s262_s2, 1664, %s514_s3, [#allocation3], %s395_s8, %s395_s8, %s396_s9  }
  0xf2   :  { %392 = dma.done.wait [#allocation3], 2048  }
  0xf3   :  { %393 = vsyncadd [#allocation3], 4294965248 }
  0xf4   :  { %271 = vsyncpa [#allocation3], 1 }

</bundles_post_ra>
